<compile_context>
chip_gen: v7x
topology: tpu7x:2x2x1
jax: 0.10.0
libtpu: 0.0.40
codegen_flags: <defaults>
</compile_context>

<pallas_src>
import functools

import jax
import jax.numpy as jnp
from jax.experimental import pallas as pl
from jax.experimental.pallas import tpu as pltpu


EPS = 1e-6  # F.pairwise_distance default eps


def _triplet_kernel(x_ref, y_ref, z_ref, w1_ref, b1_ref, w2_ref, b2_ref,
                    emb_ref, dist_ref, *, tm, d_valid):
    """One batch tile of the fused triplet embedding + pairwise distance.

      x/y/z : [tm, F]      f32   raw flattened inputs (cast to bf16 in-kernel)
      w1    : [F, H]       bf16  resident
      b1    : [1, H]       f32   resident
      w2    : [H, DPAD]    bf16  resident, lane-padded
      b2    : [1, DPAD]    f32   resident, lane-padded
      emb   : [3, tm, DPAD] f32  embeddings (x | y | z)
      dist  : [tm, 2]      f32   dist_a in lane 0, dist_b in lane 1
    """
    # Stack the triplet and cast to bf16 on the VPU so each layer is ONE MXU
    # matmul (weights pushed once) instead of three tiny M=tm matmuls.
    s = jnp.concatenate([x_ref[...], y_ref[...], z_ref[...]], axis=0)
    s = s.astype(jnp.bfloat16)                                   # [3*tm, F]

    # Layer 1: bf16 MXU matmul, f32 accumulate, f32 bias + ReLU epilogue.
    h = jnp.dot(s, w1_ref[...], preferred_element_type=jnp.float32) + b1_ref[...]
    h = jnp.maximum(h, 0.0)

    # Layer 2: cast activations back to bf16 for the MXU.
    e = jnp.dot(h.astype(jnp.bfloat16), w2_ref[...],
                preferred_element_type=jnp.float32) + b2_ref[...]  # [3*tm, DPAD]

    ex = e[0:tm]
    ey = e[tm:2 * tm]
    ez = e[2 * tm:3 * tm]

    # Lane-dense (DPAD-wide) embedding writeback, one full store per input.
    emb_ref[0] = ex
    emb_ref[1] = ey
    emb_ref[2] = ez

    # Padded lanes of the embeddings are exactly zero (zero-padded w2/b2);
    # mask them before adding EPS to keep parity with
    # F.pairwise_distance(a, b, 2) = || a - b + eps ||_2 over the true D lanes.
    lane = jax.lax.broadcasted_iota(jnp.int32, ex.shape, 1)
    valid = lane < d_valid
    diff_a = jnp.where(valid, ex - ey + EPS, 0.0)
    diff_b = jnp.where(valid, ex - ez + EPS, 0.0)

    da = jnp.sqrt(jnp.sum(diff_a * diff_a, axis=-1, keepdims=True))  # [tm, 1]
    db = jnp.sqrt(jnp.sum(diff_b * diff_b, axis=-1, keepdims=True))  # [tm, 1]

    # Compact distance writeback: [tm, 2] instead of a 128-wide broadcast slab.
    dist_ref[...] = jnp.concatenate([da, db], axis=1)


def prepare_embeddingnet_params(params):
    """One-time weight prep (hoisted out of the forward pass):
    bf16 matmul operands, zero-pad the output dim to a multiple of 128."""
    w1, b1, w2, b2 = params
    f_in, hidden = w1.shape
    d_out = w2.shape[1]
    dpad = ((d_out + 127) // 128) * 128

    w1b = w1.astype(jnp.bfloat16)
    b1f = b1.reshape(1, hidden).astype(jnp.float32)
    w2p = jnp.zeros((hidden, dpad), jnp.bfloat16).at[:, :d_out].set(
        w2.astype(jnp.bfloat16))
    b2p = jnp.zeros((1, dpad), jnp.float32).at[:, :d_out].set(
        b2.reshape(1, d_out).astype(jnp.float32))
    return (w1b, b1f, w2p, b2p), d_out


def tripletnet_forward(x, y, z, prepared_params, d_valid):
    """x, y, z: [B, C, H, W] float32.  Returns
    (dist_a [B], dist_b [B], emb_x [B,D], emb_y [B,D], emb_z [B,D])."""
    w1b, b1f, w2p, b2p = prepared_params
    B = x.shape[0]
    F_in, H = w1b.shape
    DPAD = w2p.shape[1]

    # Reshape is free (a view); no wrapper-side concat/cast pass over inputs.
    xf = x.reshape(B, F_in)
    yf = y.reshape(B, F_in)
    zf = z.reshape(B, F_in)

    # Batch tile: at toy sizes one tile; at scale 128-row tiles over a
    # "parallel" grid axis (v7x megacore sharding).
    TM = B if B <= 128 else 128
    assert B % TM == 0  # TODO(synk): pad ragged batch tiles at production B.
    grid = (B // TM,)

    flops = 2 * 3 * B * (F_in * H + H * DPAD)
    bytes_accessed = (3 * B * F_in * 4                       # f32 inputs
                      + F_in * H * 2 + H * DPAD * 2          # bf16 weights
                      + H * 4 + DPAD * 4                     # f32 biases
                      + 3 * B * DPAD * 4 + B * 2 * 4)        # outputs
    cost = pl.CostEstimate(flops=flops, transcendentals=2 * B,
                           bytes_accessed=bytes_accessed)

    kernel = functools.partial(_triplet_kernel, tm=TM, d_valid=d_valid)
    emb, dist = pl.pallas_call(
        kernel,
        out_shape=(
            jax.ShapeDtypeStruct((3, B, DPAD), jnp.float32),   # embeddings
            jax.ShapeDtypeStruct((B, 2), jnp.float32),         # distances
        ),
        grid=grid,
        in_specs=[
            pl.BlockSpec((TM, F_in), lambda i: (i, 0)),        # x tile
            pl.BlockSpec((TM, F_in), lambda i: (i, 0)),        # y tile
            pl.BlockSpec((TM, F_in), lambda i: (i, 0)),        # z tile
            pl.BlockSpec((F_in, H), lambda i: (0, 0)),         # w1 (resident)
            pl.BlockSpec((1, H), lambda i: (0, 0)),            # b1 (resident)
            pl.BlockSpec((H, DPAD), lambda i: (0, 0)),         # w2 (resident)
            pl.BlockSpec((1, DPAD), lambda i: (0, 0)),         # b2 (resident)
        ],
        out_specs=(
            pl.BlockSpec((3, TM, DPAD), lambda i: (0, i, 0)),
            pl.BlockSpec((TM, 2), lambda i: (i, 0)),
        ),
        compiler_params=pltpu.CompilerParams(
            dimension_semantics=("parallel",),
            vmem_limit_bytes=32 * 1024 * 1024,
        ),
        cost_estimate=cost,
    )(xf, yf, zf, w1b, b1f, w2p, b2p)

    emb_x = emb[0, :, :d_valid]
    emb_y = emb[1, :, :d_valid]
    emb_z = emb[2, :, :d_valid]
    dist_a = dist[:, 0]
    dist_b = dist[:, 1]
    return dist_a, dist_b, emb_x, emb_y, emb_z


def make_embeddingnet_params(key, f_in, hidden, d_out):
    """Deterministic synthetic embeddingnet weights (2-layer MLP)."""
    k1, k2, k3, k4 = jax.random.split(key, 4)
    w1 = jax.random.normal(k1, (f_in, hidden), jnp.float32) * 0.02
    b1 = jax.random.normal(k2, (1, hidden), jnp.float32) * 0.01
    w2 = jax.random.normal(k3, (hidden, d_out), jnp.float32) * 0.02
    b2 = jax.random.normal(k4, (1, d_out), jnp.float32) * 0.01
    return (w1, b1, w2, b2)


def _reference_forward(x, y, z, params):
    """Pure-JAX reference mirroring the kernel's bf16-operand / f32-accumulate
    matmul dtype policy."""
    w1, b1, w2, b2 = params
    B = x.shape[0]
    w1b = w1.astype(jnp.bfloat16)
    w2b = w2.astype(jnp.bfloat16)

    def embed(v):
        vb = v.reshape(B, -1).astype(jnp.bfloat16)
        h = jnp.dot(vb, w1b, preferred_element_type=jnp.float32) + b1
        h = jnp.maximum(h, 0.0)
        return jnp.dot(h.astype(jnp.bfloat16), w2b,
                       preferred_element_type=jnp.float32) + b2

    ex, ey, ez = embed(x), embed(y), embed(z)
    da = jnp.sqrt(jnp.sum((ex - ey + EPS) ** 2, axis=-1))
    db = jnp.sqrt(jnp.sum((ex - ez + EPS) ** 2, axis=-1))
    return da, db, ex, ey, ez


if __name__ == "__main__":
    # Small shapes: batch=2, channels=4, spatial=16x16 -> F = 4*16*16 = 1024.
    B, C, Hs, Ws = 2, 4, 16, 16
    HIDDEN, D = 128, 32

    key = jax.random.PRNGKey(0)
    kx, ky, kz, kp = jax.random.split(key, 4)
    x = jax.random.normal(kx, (B, C, Hs, Ws), jnp.float32)
    y = jax.random.normal(ky, (B, C, Hs, Ws), jnp.float32)
    z = jax.random.normal(kz, (B, C, Hs, Ws), jnp.float32)

    params = make_embeddingnet_params(kp, C * Hs * Ws, HIDDEN, D)
    prepared, d_valid = prepare_embeddingnet_params(params)  # one-time prep

    outs = tripletnet_forward(x, y, z, prepared, d_valid)
    outs = jax.block_until_ready(outs)

    refs = _reference_forward(x, y, z, params)
    for o, r in zip(outs, refs):
        assert o.shape == r.shape, (o.shape, r.shape)
        assert jnp.allclose(o, r, atol=1e-3, rtol=1e-3), "mismatch vs reference"

    print("KERNEL_OK")
</pallas_src>

<mosaic_0001>
module attributes {stable_mosaic.version = 11 : i64} {
  func.func @_triplet_kernel(%arg0: i32, %arg1: memref<2x1024xf32, #tpu.memory_space<vmem>>, %arg2: memref<2x1024xf32, #tpu.memory_space<vmem>>, %arg3: memref<2x1024xf32, #tpu.memory_space<vmem>>, %arg4: memref<1024x128xbf16, #tpu.memory_space<vmem>>, %arg5: memref<1x128xf32, #tpu.memory_space<vmem>>, %arg6: memref<128x128xbf16, #tpu.memory_space<vmem>>, %arg7: memref<1x128xf32, #tpu.memory_space<vmem>>, %arg8: memref<3x2x128xf32, #tpu.memory_space<vmem>>, %arg9: memref<2x2xf32, #tpu.memory_space<vmem>>) attributes {dimension_semantics = [#tpu.dimension_semantics<parallel>], iteration_bounds = array<i64: 1>, scalar_prefetch = 0 : i64, scratch_operands = 0 : i64, tpu.core_type = #tpu.core_type<tc>, window_params = [{transform_indices = @transform_0, window_bounds = array<i64: 2, 1024>}, {transform_indices = @transform_1, window_bounds = array<i64: 2, 1024>}, {transform_indices = @transform_2, window_bounds = array<i64: 2, 1024>}, {pipeline_mode = #tpu.pipeline_mode<synchronous>, transform_indices = @transform_3, window_bounds = array<i64: 1024, 128>}, {pipeline_mode = #tpu.pipeline_mode<synchronous>, transform_indices = @transform_4, window_bounds = array<i64: 1, 128>}, {pipeline_mode = #tpu.pipeline_mode<synchronous>, transform_indices = @transform_5, window_bounds = array<i64: 128, 128>}, {pipeline_mode = #tpu.pipeline_mode<synchronous>, transform_indices = @transform_6, window_bounds = array<i64: 1, 128>}, {transform_indices = @transform_7, window_bounds = array<i64: 3, 2, 128>}, {transform_indices = @transform_8, window_bounds = array<i64: 2, 2>}]} {
    %c0 = arith.constant 0 : index
    %c0_0 = arith.constant 0 : index
    %0 = vector.load %arg1[%c0, %c0_0] : memref<2x1024xf32, #tpu.memory_space<vmem>>, vector<2x1024xf32>
    %c0_1 = arith.constant 0 : index
    %c0_2 = arith.constant 0 : index
    %1 = vector.load %arg2[%c0_1, %c0_2] : memref<2x1024xf32, #tpu.memory_space<vmem>>, vector<2x1024xf32>
    %c0_3 = arith.constant 0 : index
    %c0_4 = arith.constant 0 : index
    %2 = vector.load %arg3[%c0_3, %c0_4] : memref<2x1024xf32, #tpu.memory_space<vmem>>, vector<2x1024xf32>
    %3 = tpu.concatenate %0, %1, %2 in 0 : vector<2x1024xf32>, vector<2x1024xf32>, vector<2x1024xf32> -> vector<6x1024xf32>
    %4 = arith.truncf %3 : vector<6x1024xf32> to vector<6x1024xbf16>
    %c0_5 = arith.constant 0 : index
    %c0_6 = arith.constant 0 : index
    %5 = vector.load %arg4[%c0_5, %c0_6] : memref<1024x128xbf16, #tpu.memory_space<vmem>>, vector<1024x128xbf16>
    %cst = arith.constant dense<0.000000e+00> : vector<6x128xf32>
    %6 = tpu.matmul %4, %5, %cst {dimension_numbers = #tpu.dot_dimension_numbers<[1], [0], [0], [1], [0, 0, 1, 1], [], []>} : vector<6x1024xbf16>, vector<1024x128xbf16>, vector<6x128xf32> -> vector<6x128xf32>
    %c0_7 = arith.constant 0 : index
    %c0_8 = arith.constant 0 : index
    %7 = vector.load %arg5[%c0_7, %c0_8] : memref<1x128xf32, #tpu.memory_space<vmem>>, vector<1x128xf32>
    %8 = vector.broadcast %7 : vector<1x128xf32> to vector<6x128xf32>
    %9 = arith.addf %6, %8 : vector<6x128xf32>
    %cst_9 = arith.constant 0.000000e+00 : f32
    %10 = vector.broadcast %cst_9 : f32 to vector<6x128xf32>
    %11 = arith.maximumf %9, %10 : vector<6x128xf32>
    %12 = arith.truncf %11 : vector<6x128xf32> to vector<6x128xbf16>
    %c0_10 = arith.constant 0 : index
    %c0_11 = arith.constant 0 : index
    %13 = vector.load %arg6[%c0_10, %c0_11] : memref<128x128xbf16, #tpu.memory_space<vmem>>, vector<128x128xbf16>
    %cst_12 = arith.constant dense<0.000000e+00> : vector<6x128xf32>
    %14 = tpu.matmul %12, %13, %cst_12 {dimension_numbers = #tpu.dot_dimension_numbers<[1], [0], [0], [1], [0, 0, 1, 1], [], []>} : vector<6x128xbf16>, vector<128x128xbf16>, vector<6x128xf32> -> vector<6x128xf32>
    %c0_13 = arith.constant 0 : index
    %c0_14 = arith.constant 0 : index
    %15 = vector.load %arg7[%c0_13, %c0_14] : memref<1x128xf32, #tpu.memory_space<vmem>>, vector<1x128xf32>
    %16 = vector.broadcast %15 : vector<1x128xf32> to vector<6x128xf32>
    %17 = arith.addf %14, %16 : vector<6x128xf32>
    %18 = vector.extract_strided_slice %17 {offsets = [0, 0], sizes = [2, 128], strides = [1, 1]} : vector<6x128xf32> to vector<2x128xf32>
    %19 = vector.extract_strided_slice %17 {offsets = [2, 0], sizes = [2, 128], strides = [1, 1]} : vector<6x128xf32> to vector<2x128xf32>
    %20 = vector.extract_strided_slice %17 {offsets = [4, 0], sizes = [2, 128], strides = [1, 1]} : vector<6x128xf32> to vector<2x128xf32>
    %c0_15 = arith.constant 0 : index
    %c0_16 = arith.constant 0 : index
    %c0_17 = arith.constant 0 : index
    %21 = vector.load %arg8[%c0_15, %c0_16, %c0_17] : memref<3x2x128xf32, #tpu.memory_space<vmem>>, vector<1x2x128xf32>
    %22 = vector.shape_cast %21 : vector<1x2x128xf32> to vector<2x128xf32>
    %23 = vector.shape_cast %18 : vector<2x128xf32> to vector<1x2x128xf32>
    tpu.vector_store %arg8[%c0_15, %c0_16, %c0_17], %23 {strides = array<i32>} : memref<3x2x128xf32, #tpu.memory_space<vmem>>, vector<1x2x128xf32>,
    %c1 = arith.constant 1 : index
    %c0_18 = arith.constant 0 : index
    %c0_19 = arith.constant 0 : index
    %24 = vector.load %arg8[%c1, %c0_18, %c0_19] : memref<3x2x128xf32, #tpu.memory_space<vmem>>, vector<1x2x128xf32>
    %25 = vector.shape_cast %24 : vector<1x2x128xf32> to vector<2x128xf32>
    %26 = vector.shape_cast %19 : vector<2x128xf32> to vector<1x2x128xf32>
    tpu.vector_store %arg8[%c1, %c0_18, %c0_19], %26 {strides = array<i32>} : memref<3x2x128xf32, #tpu.memory_space<vmem>>, vector<1x2x128xf32>,
    %c2 = arith.constant 2 : index
    %c0_20 = arith.constant 0 : index
    %c0_21 = arith.constant 0 : index
    %27 = vector.load %arg8[%c2, %c0_20, %c0_21] : memref<3x2x128xf32, #tpu.memory_space<vmem>>, vector<1x2x128xf32>
    %28 = vector.shape_cast %27 : vector<1x2x128xf32> to vector<2x128xf32>
    %29 = vector.shape_cast %20 : vector<2x128xf32> to vector<1x2x128xf32>
    tpu.vector_store %arg8[%c2, %c0_20, %c0_21], %29 {strides = array<i32>} : memref<3x2x128xf32, #tpu.memory_space<vmem>>, vector<1x2x128xf32>,
    %30 = tpu.iota {dimensions = array<i32: 1>} : vector<2x128xi32>
    %c32_i32 = arith.constant 32 : i32
    %31 = vector.broadcast %c32_i32 : i32 to vector<2x128xi32>
    %32 = arith.cmpi slt, %30, %31 : vector<2x128xi32>
    %33 = arith.subf %18, %19 : vector<2x128xf32>
    %cst_22 = arith.constant 9.99999997E-7 : f32
    %34 = vector.broadcast %cst_22 : f32 to vector<2x128xf32>
    %35 = arith.addf %33, %34 : vector<2x128xf32>
    %cst_23 = arith.constant 0.000000e+00 : f32
    %36 = vector.broadcast %cst_23 : f32 to vector<2x128xf32>
    %37 = arith.select %32, %35, %36 : vector<2x128xi1>, vector<2x128xf32>
    %38 = arith.subf %18, %20 : vector<2x128xf32>
    %cst_24 = arith.constant 9.99999997E-7 : f32
    %39 = vector.broadcast %cst_24 : f32 to vector<2x128xf32>
    %40 = arith.addf %38, %39 : vector<2x128xf32>
    %cst_25 = arith.constant 0.000000e+00 : f32
    %41 = vector.broadcast %cst_25 : f32 to vector<2x128xf32>
    %42 = arith.select %32, %40, %41 : vector<2x128xi1>, vector<2x128xf32>
    %43 = arith.mulf %37, %37 : vector<2x128xf32>
    %cst_26 = arith.constant dense<0.000000e+00> : vector<2xf32>
    %44 = vector.multi_reduction <add>, %43, %cst_26 [1] : vector<2x128xf32> to vector<2xf32>
    %45 = vector.shape_cast %44 : vector<2xf32> to vector<2x1xf32>
    %46 = math.sqrt %45 : vector<2x1xf32>
    %47 = arith.mulf %42, %42 : vector<2x128xf32>
    %cst_27 = arith.constant dense<0.000000e+00> : vector<2xf32>
    %48 = vector.multi_reduction <add>, %47, %cst_27 [1] : vector<2x128xf32> to vector<2xf32>
    %49 = vector.shape_cast %48 : vector<2xf32> to vector<2x1xf32>
    %50 = math.sqrt %49 : vector<2x1xf32>
    %51 = tpu.concatenate %46, %50 in 1 : vector<2x1xf32>, vector<2x1xf32> -> vector<2x2xf32>
    %c0_28 = arith.constant 0 : index
    %c0_29 = arith.constant 0 : index
    %52 = vector.load %arg9[%c0_28, %c0_29] : memref<2x2xf32, #tpu.memory_space<vmem>>, vector<2x2xf32>
    tpu.vector_store %arg9[%c0_28, %c0_29], %51 {strides = array<i32>} : memref<2x2xf32, #tpu.memory_space<vmem>>, vector<2x2xf32>,
    return
  }
  func.func @transform_0(%arg0: i32) -> (i32, i32) {
    %c0_i32 = arith.constant 0 : i32
    %c0_i32_0 = arith.constant 0 : i32
    return %arg0, %c0_i32 : i32, i32
  }
  func.func @transform_1(%arg0: i32) -> (i32, i32) {
    %c0_i32 = arith.constant 0 : i32
    %c0_i32_0 = arith.constant 0 : i32
    return %arg0, %c0_i32 : i32, i32
  }
  func.func @transform_2(%arg0: i32) -> (i32, i32) {
    %c0_i32 = arith.constant 0 : i32
    %c0_i32_0 = arith.constant 0 : i32
    return %arg0, %c0_i32 : i32, i32
  }
  func.func @transform_3(%arg0: i32) -> (i32, i32) {
    %c0_i32 = arith.constant 0 : i32
    %c0_i32_0 = arith.constant 0 : i32
    %c0_i32_1 = arith.constant 0 : i32
    return %c0_i32, %c0_i32_0 : i32, i32
  }
  func.func @transform_4(%arg0: i32) -> (i32, i32) {
    %c0_i32 = arith.constant 0 : i32
    %c0_i32_0 = arith.constant 0 : i32
    %c0_i32_1 = arith.constant 0 : i32
    return %c0_i32, %c0_i32_0 : i32, i32
  }
  func.func @transform_5(%arg0: i32) -> (i32, i32) {
    %c0_i32 = arith.constant 0 : i32
    %c0_i32_0 = arith.constant 0 : i32
    %c0_i32_1 = arith.constant 0 : i32
    return %c0_i32, %c0_i32_0 : i32, i32
  }
  func.func @transform_6(%arg0: i32) -> (i32, i32) {
    %c0_i32 = arith.constant 0 : i32
    %c0_i32_0 = arith.constant 0 : i32
    %c0_i32_1 = arith.constant 0 : i32
    return %c0_i32, %c0_i32_0 : i32, i32
  }
  func.func @transform_7(%arg0: i32) -> (i32, i32, i32) {
    %c0_i32 = arith.constant 0 : i32
    %c0_i32_0 = arith.constant 0 : i32
    %c0_i32_1 = arith.constant 0 : i32
    return %c0_i32, %arg0, %c0_i32_0 : i32, i32, i32
  }
  func.func @transform_8(%arg0: i32) -> (i32, i32) {
    %c0_i32 = arith.constant 0 : i32
    %c0_i32_0 = arith.constant 0 : i32
    return %arg0, %c0_i32 : i32, i32
  }
}

</mosaic_0001>

<bundles_post_ra>
// kernel: tpu_custom_call.1
= control target key start
LH: loop header
LB: loop body
LE: loop exit
PB: predicated region body
PF: predicated region fallthrough
CT: control target
= control target key end

     0   :  { %14 = vsyncpa [#allocation3], 0  ;;  %s1774_s0 = inlined_call_operand.hbm [shape: f32[2,1024], index: 0, kind: input, shape index: {}]   ;;  %s1775_s1 = inlined_call_operand.hbm [shape: f32[2,1024], index: 1, kind: input, shape index: {}]   ;;  %s1776_s2 = inlined_call_operand.hbm [shape: f32[2,1024], index: 2, kind: input, shape index: {}]   ;;  %s1777_s3 = inlined_call_operand.hbm [shape: bf16[1024,128], index: 3, kind: input, shape index: {}]   ;;  %s1778_s4 = inlined_call_operand.vmem [shape: f32[1,128], index: 4, kind: input, shape index: {}]   ;;  %s1779_s5 = inlined_call_operand.hbm [shape: bf16[128,128], index: 5, kind: input, shape index: {}]   ;;  %s1780_s6 = inlined_call_operand.vmem [shape: f32[1,128], index: 6, kind: input, shape index: {}]   ;;  %s1781_s7 = inlined_call_operand.hbm [shape: f32[3,2,128], index: 7, kind: output, shape index: {0}]   ;;  %s1782_s8 = inlined_call_operand.hbm [shape: f32[2,2], index: 8, kind: output, shape index: {1}]  }
   0x1   :  { %15 = vsyncpa [#allocation6], 0 }
   0x2   :  { %16 = vsyncpa [#allocation9], 0 }
   0x3   :  { %17 = vsyncpa [#allocation4], 0 }
   0x4   :  { %18 = vsyncpa [#allocation13], 0  ;;  %s1578_s27 = smov [#allocation5]   ;;  %s1579_s29 = smov [#allocation8]  }
   0x5   :  { %s35_s28 = sshll.u32 %s1578_s27, 4  ;;  %s54_s30 = sshll.u32 %s1579_s29, 4  ;;  %s36_s28 = int_to_ptr.vmem [resolvable:$true] %s35_s28  ;;  %s1637_s30 = int_to_ptr.vmem [resolvable:$true] %s54_s30 }
   0x6   :  { %s1414_s11 = scalar_lea.hbm %s1775_s1, 256 }
   0x7   :  { %p1415_p0 = scmp.ne.s32.totalorder %s1775_s1, %s1414_s11  ;;  %p1418_p1 = scmp.lt.u32.totalorder %s1414_s11, %s1775_s1 }
   0x9   :  { %p1420_p2 = pnand %p1418_p1, %p1415_p0 }
   0xb   :  { %1423 = shalt.err (!%p1420_p2)
}
   0xc   :  { %s1424_s16 = scalar_lea.vmem %s36_s28, 256  ;;  %p1429_p4 = scmp.lt.s32.totalorder %s36_s28, %s36_s28 }
   0xd   :  { %p1425_p3 = scmp.ne.s32.totalorder %s36_s28, %s1424_s16  ;;  %p1430_p5 = scmp.lt.s32.totalorder %s1424_s16, %s1424_s16 }
   0xf   :  { %p1431_p6 = por %p1430_p5, %p1429_p4 }
  0x11   :  { %p1432_p7 = pnand %p1431_p6, %p1425_p3 }
  0x13   :  { %1435 = shalt.err (!%p1432_p7)
}
  0x14   :  { %38 = dma.hbm_to_vmem [thread:$0]  %s1775_s1, 256, %s36_s28, [#allocation6]  }
  0x15   :  { %s1436_s21 = scalar_lea.hbm %s1777_s3, 8192 }
  0x16   :  { %p1437_p8 = scmp.ne.s32.totalorder %s1777_s3, %s1436_s21  ;;  %p1440_p9 = scmp.lt.u32.totalorder %s1436_s21, %s1777_s3 }
  0x18   :  { %p1442_p10 = pnand %p1440_p9, %p1437_p8 }
  0x1a   :  { %1445 = shalt.err (!%p1442_p10)
}
  0x1b   :  { %s1446_s26 = scalar_lea.vmem %s1637_s30, 8192  ;;  %p1451_p12 = scmp.lt.s32.totalorder %s1637_s30, %s1637_s30 }
  0x1c   :  { %p1447_p11 = scmp.ne.s32.totalorder %s1637_s30, %s1446_s26  ;;  %p1452_p13 = scmp.lt.s32.totalorder %s1446_s26, %s1446_s26 }
  0x1e   :  { %p1453_p0 = por %p1452_p13, %p1451_p12 }
  0x20   :  { %p1454_p1 = pnand %p1453_p0, %p1447_p11 }
  0x22   :  { %1457 = shalt.err (!%p1454_p1)
}
  0x23   :  { %s1580_s1 = smov 64   ;;  %s1581_s27 = smov 4  }
  0x24   :  { %60 = dma.hbm_to_vmem [thread:$0]  %s1777_s3, 8192, %s1637_s30, [#allocation9], %s1580_s1, %s1580_s1, %s1581_s27  }
  0x25   :  { %s1582_s9 = smov [#allocation2]   ;;  %s1583_s11 = smov [#allocation7]  }
  0x26   :  { %s25_s10 = sshll.u32 %s1582_s9, 4  ;;  %s45_s12 = sshll.u32 %s1583_s11, 4  ;;  %s26_s10 = int_to_ptr.vmem [resolvable:$true] %s25_s10  ;;  %s46_s12 = int_to_ptr.vmem [resolvable:$true] %s45_s12 }
  0x27   :  { %s1458_s15 = scalar_lea.hbm %s1774_s0, 256 }
  0x28   :  { %p1459_p2 = scmp.ne.s32.totalorder %s1774_s0, %s1458_s15  ;;  %p1462_p3 = scmp.lt.u32.totalorder %s1458_s15, %s1774_s0 }
  0x2a   :  { %p1464_p4 = pnand %p1462_p3, %p1459_p2 }
  0x2c   :  { %1467 = shalt.err (!%p1464_p4)
}
  0x2d   :  { %s1468_s3 = scalar_lea.vmem %s26_s10, 256  ;;  %p1473_p6 = scmp.lt.s32.totalorder %s26_s10, %s26_s10 }
  0x2e   :  { %p1469_p5 = scmp.ne.s32.totalorder %s26_s10, %s1468_s3  ;;  %p1474_p7 = scmp.lt.s32.totalorder %s1468_s3, %s1468_s3 }
  0x30   :  { %p1475_p8 = por %p1474_p7, %p1473_p6 }
  0x32   :  { %p1476_p9 = pnand %p1475_p8, %p1469_p5 }
  0x34   :  { %1479 = shalt.err (!%p1476_p9)
}
  0x35   :  { %28 = dma.hbm_to_vmem [thread:$0]  %s1774_s0, 256, %s26_s10, [#allocation3]  }
  0x36   :  { %s1480_s23 = scalar_lea.hbm %s1776_s2, 256 }
  0x37   :  { %p1481_p10 = scmp.ne.s32.totalorder %s1776_s2, %s1480_s23  ;;  %p1484_p11 = scmp.lt.u32.totalorder %s1480_s23, %s1776_s2 }
  0x39   :  { %p1486_p12 = pnand %p1484_p11, %p1481_p10 }
  0x3b   :  { %1489 = shalt.err (!%p1486_p12)
}
  0x3c   :  { %s1490_s29 = scalar_lea.vmem %s46_s12, 256  ;;  %p1495_p0 = scmp.lt.s32.totalorder %s46_s12, %s46_s12 }
  0x3d   :  { %p1491_p13 = scmp.ne.s32.totalorder %s46_s12, %s1490_s29  ;;  %p1496_p1 = scmp.lt.s32.totalorder %s1490_s29, %s1490_s29 }
  0x3f   :  { %p1497_p2 = por %p1496_p1, %p1495_p0 }
  0x41   :  { %p1498_p3 = pnand %p1497_p2, %p1491_p13 }
  0x43   :  { %1501 = shalt.err (!%p1498_p3)
}
  0x44   :  { %48 = dma.hbm_to_vmem [thread:$0]  %s1776_s2, 256, %s46_s12, [#allocation6]  }
  0x45   :  { %s1584_s10 = smov [#allocation10]   ;;  %s1502_s15 = scalar_lea.hbm %s1779_s5, 1024 }
  0x46   :  { %s68_s11 = sshll.u32 %s1584_s10, 4  ;;  %p1503_p4 = scmp.ne.s32.totalorder %s1779_s5, %s1502_s15  ;;  %s69_s11 = int_to_ptr.vmem [resolvable:$true] %s68_s11 }
  0x47   :  { %p1506_p5 = scmp.lt.u32.totalorder %s1502_s15, %s1779_s5 }
  0x49   :  { %p1508_p6 = pnand %p1506_p5, %p1503_p4 }
  0x4b   :  { %1511 = shalt.err (!%p1508_p6)
}
  0x4c   :  { %s1512_s3 = scalar_lea.vmem %s69_s11, 1024  ;;  %p1517_p8 = scmp.lt.s32.totalorder %s69_s11, %s69_s11 }
  0x4d   :  { %p1513_p7 = scmp.ne.s32.totalorder %s69_s11, %s1512_s3  ;;  %p1518_p9 = scmp.lt.s32.totalorder %s1512_s3, %s1512_s3 }
  0x4f   :  { %p1519_p10 = por %p1518_p9, %p1517_p8 }
  0x51   :  { %p1520_p11 = pnand %p1519_p10, %p1513_p7 }
  0x53   :  { %1523 = shalt.err (!%p1520_p11)
}
  0x54   :  { %74 = dma.hbm_to_vmem [thread:$0]  %s1779_s5, 1024, %s69_s11, [#allocation9], %s1580_s1, %s1580_s1, %s1581_s27  }
  0x55   :  { %1568 = dma.done.wait [#allocation3], 256  }
  0x56   :  { %1569 = vsyncadd [#allocation3], 4294967040 }
  0x57   :  { %1570 = dma.done.wait [#allocation6], 512  }
  0x58   :  { %1571 = vsyncadd [#allocation6], 4294966784 }
  0x59   :  { %1572 = dma.done.wait [#allocation9], 9216  }
  0x5a   :  { %1573 = vsyncadd [#allocation9], 4294958080  ;;  %v1332_v0 = vld [vmem:[#allocation8 + $0x40] sm:$0xff]   ;;  %v1336_v4 = vld [vmem:[#allocation8 + $0x48] sm:$0xff]   ;;  %v1585_v22 = vmov 1983009808   ;;  %v105_v24 = vlaneseq }
  0x5b   :  { %v1333_v1 = vld [vmem:[#allocation8 + $0xc0] sm:$0xff]   ;;  %1201 = vmatprep.subr.bf16.mxu0 %v1332_v0  ;;  %v1337_v5 = vld [vmem:[#allocation8 + $0xc8] sm:$0xff]   ;;  %v1340_v8 = vld [vmem:[#allocation8 + $0x50] sm:$0xff]   ;;  %v103_v23 = vunpack.c.l.s4 %v1585_v22  ;;  %vm231_vm0 = vcmask 1041408   ;;  %vm240_vm1 = vcmask 1043456   ;;  %vm1587_vm2 = vmmov 0  }
  0x5c   :  { %v1334_v2 = vld [vmem:[#allocation8] sm:$0xff]   ;;  %1223 = vmatprep.subr.bf16.mxu1 %v1333_v1  ;;  %v1338_v6 = vld [vmem:[#allocation8 + $0x8] sm:$0xff]   ;;  %v1341_v9 = vld [vmem:[#allocation8 + $0xd0] sm:$0xff]   ;;  %v106_v30 = vshrl.u32 %v105_v24, 7 }
  0x5d   :  { %v1335_v3 = vld [vmem:[#allocation8 + $0x80] sm:$0xff]   ;;  %1202 = vmatpush3.bf16.msra.mxu0 %v1334_v2  ;;  %v1339_v7 = vld [vmem:[#allocation8 + $0x88] sm:$0xff]   ;;  %v1342_v10 = vld [vmem:[#allocation8 + $0x10] sm:$0xff]   ;;  %v104_v29 = vunpack.c.0.s8 %v103_v23 }
  0x5e   :  { %1224 = vmatpush3.bf16.msra.mxu1 %v1335_v3  ;;  %1203 = vmatprep.subr.bf16.mxu0 %v1336_v4  ;;  %v1343_v11 = vld [vmem:[#allocation8 + $0x90] sm:$0xff]   ;;  %v1344_v12 = vld [vmem:[#allocation8 + $0x58] sm:$0xff]   ;;  %v1348_v16 = vld [vmem:[#allocation8 + $0x60] sm:$0xff]  }
  0x5f   :  { %1225 = vmatprep.subr.bf16.mxu1 %v1337_v5  ;;  %v1345_v13 = vld [vmem:[#allocation8 + $0xd8] sm:$0xff]   ;;  %v1349_v17 = vld [vmem:[#allocation8 + $0xe0] sm:$0xff]   ;;  %v1352_v20 = vld [vmem:[#allocation8 + $0x68] sm:$0xff]   ;;  %v1711_v35 = vsub.s32 %v104_v29, %v106_v30 }
  0x60   :  { %v1346_v14 = vld [vmem:[#allocation8 + $0x18] sm:$0xff]   ;;  %v1350_v18 = vld [vmem:[#allocation8 + $0x20] sm:$0xff]   ;;  %v1353_v21 = vld [vmem:[#allocation8 + $0xe8] sm:$0xff]  }
  0x61   :  { %1204 = vmatpush3.bf16.msra.mxu0 %v1338_v6  ;;  %v1347_v15 = vld [vmem:[#allocation8 + $0x98] sm:$0xff]   ;;  %v1351_v19 = vld [vmem:[#allocation8 + $0xa0] sm:$0xff]   ;;  %v1354_v25 = vld [vmem:[#allocation8 + $0x28] sm:$0xff]  }
  0x62   :  { %1226 = vmatpush3.bf16.msra.mxu1 %v1339_v7  ;;  %1205 = vmatprep.subr.bf16.mxu0 %v1340_v8  ;;  %v1355_v26 = vld [vmem:[#allocation8 + $0xa8] sm:$0xff]   ;;  %v1356_v27 = vld [vmem:[#allocation8 + $0x70] sm:$0xff]   ;;  %v1360_v33 = vld [vmem:[#allocation8 + $0x78] sm:$0xff]  }
  0x63   :  { %1227 = vmatprep.subr.bf16.mxu1 %v1341_v9  ;;  %v1357_v28 = vld [vmem:[#allocation8 + $0xf0] sm:$0xff]   ;;  %v1361_v34 = vld [vmem:[#allocation8 + $0xf8] sm:$0xff]   ;;  %v95_v39 = vld [vmem:[#allocation5] sm:$0xff] }
  0x64   :  { %v1358_v31 = vld [vmem:[#allocation8 + $0x30] sm:$0xff]   ;;  %v1362_v36 = vld [vmem:[#allocation8 + $0x38] sm:$0xff]   ;;  %v145_v42 = vcombine.low %v95_v39, %v95_v39  ;;  %v1367_v45 = vld [vmem:[#allocation8 + $0x140] sm:$0xff]   ;;  %v159_v46 = vrot.slane %v95_v39, %v1711_v35 }
  0x65   :  { %1206 = vmatpush3.bf16.msra.mxu0 %v1342_v10  ;;  %v1359_v32 = vld [vmem:[#allocation8 + $0xb0] sm:$0xff]   ;;  %v1363_v37 = vld [vmem:[#allocation8 + $0xb8] sm:$0xff]   ;;  %v1368_v48 = vld [vmem:[#allocation8 + $0x1c0] sm:$0xff]  }
  0x66   :  { %1228 = vmatpush3.bf16.msra.mxu1 %v1343_v11  ;;  %1207 = vmatprep.subr.bf16.mxu0 %v1344_v12  ;;  %v93_v38 = vld [vmem:[#allocation2] sm:$0xff]  ;;  %v152_v50 = vrot.slane %v145_v42, %v1711_v35  ;;  %v161_v53 = vcombine.high %v159_v46, %v159_v46  ;;  %v1369_v63 = vld [vmem:[#allocation8 + $0x100] sm:$0xff]   ;;  %v1371_v8 = vld [vmem:[#allocation8 + $0x148] sm:$0xff]  }
  0x67   :  { %1229 = vmatprep.subr.bf16.mxu1 %v1345_v13  ;;  %v97_v40 = vld [vmem:[#allocation7] sm:$0xff]  ;;  %v108_v41 = vrot.slane %v93_v38, %v1711_v35  ;;  %v101_v44 = vcombine.high %v93_v38, %v93_v38  ;;  %v1370_v4 = vld [vmem:[#allocation8 + $0x180] sm:$0xff]   ;;  %v1372_v9 = vld [vmem:[#allocation8 + $0x1c8] sm:$0xff]  }
  0x68   :  { %v196_v43 = vrot.slane %v97_v40, %v1711_v35  ;;  %v189_v47 = vcombine.high %v97_v40, %v97_v40  ;;  %v160_v55 = vcombine.high %v152_v50, %v152_v50  ;;  %v1373_v10 = vld [vmem:[#allocation8 + $0x108] sm:$0xff]   ;;  %v1375_v12 = vld [vmem:[#allocation8 + $0x150] sm:$0xff]   ;;  %v1385_v22 = vld [vmem:[#allocation8 + $0x120] sm:$0xff]  }
  0x69   :  { %1208 = vmatpush3.bf16.msra.mxu0 %v1346_v14  ;;  %v116_v49 = vcombine.high %v108_v41, %v108_v41  ;;  %v115_v52 = vrot.slane %v101_v44, %v1711_v35  ;;  %v232_v57 = vsel %vm231_vm0, %v108_v41, %v152_v50  ;;  %v1374_v11 = vld [vmem:[#allocation8 + $0x188] sm:$0xff]   ;;  %v1376_v13 = vld [vmem:[#allocation8 + $0x1d0] sm:$0xff]   ;;  %v1386_v23 = vld [vmem:[#allocation8 + $0x1a0] sm:$0xff]  }
  0x6a   :  { %1230 = vmatpush3.bf16.msra.mxu1 %v1347_v15  ;;  %1209 = vmatprep.subr.bf16.mxu0 %v1348_v16  ;;  %v204_v51 = vcombine.low %v196_v43, %v196_v43  ;;  %v203_v54 = vrot.slane %v189_v47, %v1711_v35  ;;  %v1377_v14 = vld [vmem:[#allocation8 + $0x110] sm:$0xff]   ;;  %v1379_v16 = vld [vmem:[#allocation8 + $0x158] sm:$0xff]  }
  0x6b   :  { %1231 = vmatprep.subr.bf16.mxu1 %v1349_v17  ;;  %v117_v56 = vcombine.high %v115_v52, %v115_v52  ;;  %v234_v58 = vsel %vm231_vm0, %v115_v52, %v159_v46  ;;  %v233_v61 = vsel %vm231_vm0, %v116_v49, %v160_v55  ;;  %v1378_v15 = vld [vmem:[#allocation8 + $0x190] sm:$0xff]   ;;  %v1380_v17 = vld [vmem:[#allocation8 + $0x1d8] sm:$0xff]  }
  0x6c   :  { %v205_v59 = vcombine.low %v203_v54, %v203_v54  ;;  %v241_v60 = vsel %vm240_vm1, %v232_v57, %v204_v51  ;;  %v242_v0 = vsel %vm240_vm1, %v233_v61, %v196_v43  ;;  %v1391_v29 = vld [vmem:[#allocation8 + $0x170] sm:$0xff]   ;;  %v98_v38 = vld [vmem:[#allocation7 + $0x8] sm:$0xff] }
  0x6d   :  { %1210 = vmatpush3.bf16.msra.mxu0 %v1350_v18  ;;  %v235_v62 = vsel %vm231_vm0, %v117_v56, %v161_v53  ;;  %v249_v2 = vpack.c.bf16 %v241_v60, %v241_v60  ;;  %v250_v5 = vpack.c.bf16 %v242_v0, %v242_v0  ;;  %v1381_v18 = vld [vmem:[#allocation8 + $0x118] sm:$0xff]   ;;  %v1392_v30 = vld [vmem:[#allocation8 + $0x1f0] sm:$0xff]   ;;  %v213_v41 = vrot.slane %v98_v38, %v1711_v35 }
  0x6e   :  { %1232 = vmatpush3.bf16.msra.mxu1 %v1351_v19  ;;  %1211 = vmatprep.subr.bf16.mxu0 %v1352_v20  ;;  %v244_v1 = vsel %vm240_vm1, %v235_v62, %v203_v54  ;;  %v243_v3 = vsel %vm240_vm1, %v234_v58, %v205_v59  ;;  %v1382_v19 = vld [vmem:[#allocation8 + $0x198] sm:$0xff]   ;;  %v1383_v20 = vld [vmem:[#allocation8 + $0x160] sm:$0xff]   ;;  %v206_v46 = vcombine.high %v98_v38, %v98_v38 }
  0x6f   :  { %1233 = vmatprep.subr.bf16.mxu1 %v1353_v21  ;;  %v252_v6 = vpack.c.bf16 %v244_v1, %v244_v1  ;;  %v251_v7 = vpack.c.bf16 %v243_v3, %v243_v3  ;;  %808 = vmatprep.mubr.bf16.mxu0 %v250_v5  ;;  %v1384_v21 = vld [vmem:[#allocation8 + $0x1e0] sm:$0xff]   ;;  %v1397_v42 = vld [vmem:[#allocation8 + $0x138] sm:$0xff]   ;;  %v221_v49 = vcombine.low %v213_v41, %v213_v41  ;;  %v1403_v5 = vld [vmem:[#allocation10 + $0x8] sm:$0xff]  }
  0x70   :  { %v1398_v43 = vld [vmem:[#allocation8 + $0x1b8] sm:$0xff]   ;;  %v220_v52 = vrot.slane %v206_v46, %v1711_v35  ;;  %v1402_v3 = vld [vmem:[#allocation10] sm:$0xff]   ;;  %v1055_v46 = vand.u32 127, %v105_v24 }
  0x71   :  { %1212 = vmatpush3.bf16.msra.mxu0 %v1354_v25  ;;  %848 = vmatprep.mubr.bf16.mxu1 %v252_v6  ;;  %v1387_v25 = vld [vmem:[#allocation8 + $0x168] sm:$0xff]   ;;  %v1404_v6 = vld [vmem:[#allocation10 + $0x10] sm:$0xff]  }
  0x72   :  { %1234 = vmatpush3.bf16.msra.mxu1 %v1355_v26  ;;  %1213 = vmatprep.subr.bf16.mxu0 %v1356_v27  ;;  %v1388_v26 = vld [vmem:[#allocation8 + $0x1e8] sm:$0xff]   ;;  %v222_v56 = vcombine.low %v220_v52, %v220_v52  ;;  %vm1056_vm3 = vcmp.lt.s32.totalorder %v1055_v46, 32 }
  0x73   :  { %1235 = vmatprep.subr.bf16.mxu1 %v1357_v28  ;;  %v1389_v27 = vld [vmem:[#allocation8 + $0x128] sm:$0xff]  }
  0x74   :  { %v1390_v28 = vld [vmem:[#allocation8 + $0x1a8] sm:$0xff]  }
  0x75   :  { %1214 = vmatpush3.bf16.msra.mxu0 %v1358_v31  ;;  %v1393_v31 = vld [vmem:[#allocation8 + $0x130] sm:$0xff]  }
  0x76   :  { %1236 = vmatpush3.bf16.msra.mxu1 %v1359_v32  ;;  %1215 = vmatprep.subr.bf16.mxu0 %v1360_v33  ;;  %v1394_v32 = vld [vmem:[#allocation8 + $0x1b0] sm:$0xff]   ;;  %v1395_v33 = vld [vmem:[#allocation8 + $0x178] sm:$0xff]  }
  0x77   :  { %1237 = vmatprep.subr.bf16.mxu1 %v1361_v34  ;;  %v1396_v34 = vld [vmem:[#allocation8 + $0x1f8] sm:$0xff]  }
  0x79   :  { %1216 = vmatpush3.bf16.msra.mxu0 %v1362_v36  ;;  %v94_v36 = vld [vmem:[#allocation2 + $0x8] sm:$0xff] }
  0x7a   :  { %1238 = vmatpush3.bf16.msra.mxu1 %v1363_v37  ;;  %1245 = vmatprep.subr.bf16.mxu0 %v1367_v45  ;;  %v96_v37 = vld [vmem:[#allocation5 + $0x8] sm:$0xff]  ;;  %v125_v39 = vrot.slane %v94_v36, %v1711_v35  ;;  %v118_v44 = vcombine.high %v94_v36, %v94_v36 }
  0x7b   :  { %1267 = vmatprep.subr.bf16.mxu1 %v1368_v48  ;;  %v162_v40 = vcombine.low %v96_v37, %v96_v37  ;;  %v176_v45 = vrot.slane %v96_v37, %v1711_v35 }
  0x7c   :  { %809 = vmatmul.mubr.bf16.vlgmr.msra.gmra.mrb[0].mxu0 %v249_v2  ;;  %v133_v47 = vcombine.high %v125_v39, %v125_v39  ;;  %v132_v50 = vrot.slane %v118_v44, %v1711_v35 }
  0x7d   :  { %849 = vmatmul.mubr.bf16.vlgmr.msra.gmra.mrb[0].mxu1 %v251_v7  ;;  %1246 = vmatpush3.bf16.msra.mxu0 %v1369_v63  ;;  %v169_v48 = vrot.slane %v162_v40, %v1711_v35  ;;  %v178_v51 = vcombine.high %v176_v45, %v176_v45  ;;  %v1405_v7 = vld [vmem:[#allocation10 + $0x18] sm:$0xff]  }
  0x7e   :  { %1268 = vmatpush3.bf16.msra.mxu1 %v1370_v4  ;;  %1247 = vmatprep.subr.bf16.mxu0 %v1371_v8  ;;  %v134_v55 = vcombine.high %v132_v50, %v132_v50  ;;  %v238_v58 = vsel %vm231_vm0, %v132_v50, %v176_v45  ;;  %v1586_v4 = vmov 0.0   ;;  %v1406_v8 = vld [vmem:[#allocation10 + $0x20] sm:$0xff]  }
  0x7f   :  { %1269 = vmatprep.subr.bf16.mxu1 %v1372_v9  ;;  %v177_v53 = vcombine.high %v169_v48, %v169_v48  ;;  %v236_v54 = vsel %vm231_vm0, %v125_v39, %v169_v48  ;;  %v247_v62 = vsel %vm240_vm1, %v238_v58, %v222_v56  ;;  %v1407_v9 = vld [vmem:[#allocation10 + $0x28] sm:$0xff]  }
  0x80   :  { %v245_v57 = vsel %vm240_vm1, %v236_v54, %v221_v49  ;;  %v239_v35 = vsel %vm231_vm0, %v134_v55, %v178_v51  ;;  %v255_v1 = vpack.c.bf16 %v247_v62, %v247_v62 }
  0x81   :  { %1248 = vmatpush3.bf16.msra.mxu0 %v1373_v10  ;;  %v237_v59 = vsel %vm231_vm0, %v133_v47, %v177_v53  ;;  %v253_v60 = vpack.c.bf16 %v245_v57, %v245_v57  ;;  %v248_v0 = vsel %vm240_vm1, %v239_v35, %v220_v52  ;;  %v1408_v10 = vld [vmem:[#allocation10 + $0x30] sm:$0xff]  }
  0x82   :  { %1270 = vmatpush3.bf16.msra.mxu1 %v1374_v11  ;;  %1249 = vmatprep.subr.bf16.mxu0 %v1375_v12  ;;  %v246_v61 = vsel %vm240_vm1, %v237_v59, %v213_v41  ;;  %v256_v2 = vpack.c.bf16 %v248_v0, %v248_v0  ;;  %v1409_v11 = vld [vmem:[#allocation10 + $0x38] sm:$0xff]   ;;  %v1192_v41 = vld [vmem:[%s1780_s6] ss:$0 sm:$0xff]  ;;  %s1588_s6 = smov [#allocation11]  }
  0x83   :  { %1271 = vmatprep.subr.bf16.mxu1 %v1376_v13  ;;  %v254_v63 = vpack.c.bf16 %v246_v61, %v246_v61  ;;  %s1099_s30 = sshll.u32 %s1588_s6, 4  ;;  %s1100_s30 = int_to_ptr.vmem [resolvable:$true] %s1099_s30 }
  0x84   :  { %928 = vmatprep.mubr.bf16.mxu1 %v256_v2  ;;  %s1524_s20 = scalar_lea.vmem %s1100_s30, 96  ;;  %p1529_p13 = scmp.lt.s32.totalorder %s1100_s30, %s1100_s30 }
  0x85   :  { %1250 = vmatpush3.bf16.msra.mxu0 %v1377_v14  ;;  %888 = vmatprep.mubr.bf16.mxu0 %v254_v63  ;;  %v1127_v14 = vld [vmem:[%s1778_s4] ss:$0 sm:$0xff]  ;;  %p1525_p12 = scmp.ne.s32.totalorder %s1100_s30, %s1524_s20  ;;  %p1530_p0 = scmp.lt.s32.totalorder %s1524_s20, %s1524_s20 }
  0x86   :  { %1272 = vmatpush3.bf16.msra.mxu1 %v1378_v15  ;;  %1251 = vmatprep.subr.bf16.mxu0 %v1379_v16 }
  0x87   :  { %1273 = vmatprep.subr.bf16.mxu1 %v1380_v17  ;;  %p1531_p1 = por %p1530_p0, %p1529_p13 }
  0x89   :  { %1252 = vmatpush3.bf16.msra.mxu0 %v1381_v18  ;;  %p1532_p2 = pnand %p1531_p1, %p1525_p12 }
  0x8a   :  { %1274 = vmatpush3.bf16.msra.mxu1 %v1382_v19  ;;  %1253 = vmatprep.subr.bf16.mxu0 %v1383_v20 }
  0x8b   :  { %1275 = vmatprep.subr.bf16.mxu1 %v1384_v21 }
  0x8d   :  { %1254 = vmatpush3.bf16.msra.mxu0 %v1385_v22 }
  0x8e   :  { %1276 = vmatpush3.bf16.msra.mxu1 %v1386_v23  ;;  %1255 = vmatprep.subr.bf16.mxu0 %v1387_v25 }
  0x8f   :  { %1277 = vmatprep.subr.bf16.mxu1 %v1388_v26 }
  0x91   :  { %1256 = vmatpush3.bf16.msra.mxu0 %v1389_v27 }
  0x92   :  { %1278 = vmatpush3.bf16.msra.mxu1 %v1390_v28  ;;  %1257 = vmatprep.subr.bf16.mxu0 %v1391_v29 }
  0x93   :  { %1279 = vmatprep.subr.bf16.mxu1 %v1392_v30 }
  0x95   :  { %1258 = vmatpush3.bf16.msra.mxu0 %v1393_v31 }
  0x96   :  { %1280 = vmatpush3.bf16.msra.mxu1 %v1394_v32  ;;  %1259 = vmatprep.subr.bf16.mxu0 %v1395_v33 }
  0x97   :  { %1281 = vmatprep.subr.bf16.mxu1 %v1396_v34 }
  0x99   :  { %1260 = vmatpush3.bf16.msra.mxu0 %v1397_v42 }
  0x9a   :  { %1282 = vmatpush3.bf16.msra.mxu1 %v1398_v43  ;;  %1298 = vmatprep.subr.bf16.mxu0 %v1586_v4 }
  0x9c   :  { %889 = vmatmul.mubr.bf16.vlgmr.msra.gmra.mrb[4].mxu0 %v253_v60 }
  0x9d   :  { %929 = vmatmul.mubr.bf16.vlgmr.msra.gmra.mrb[4].mxu1 %v255_v1  ;;  %1299 = vmatpush3.bf16.msra.mxu0 %v1402_v3 }
  0x9e   :  { %1300 = vmatprep.subr.bf16.mxu0 %v1586_v4  ;;  %1314 = vmatprep.mubr.msk.bf16.mxu0 %vm1587_vm2, %v1586_v4 }
  0xa1   :  { %1301 = vmatpush3.bf16.msra.mxu0 %v1403_v5 }
  0xa2   :  { %1302 = vmatprep.subr.bf16.mxu0 %v1586_v4 }
  0xa5   :  { %1303 = vmatpush3.bf16.msra.mxu0 %v1404_v6 }
  0xa6   :  { %1304 = vmatprep.subr.bf16.mxu0 %v1586_v4 }
  0xa9   :  { %1305 = vmatpush3.bf16.msra.mxu0 %v1405_v7 }
  0xaa   :  { %1306 = vmatprep.subr.bf16.mxu0 %v1586_v4 }
  0xad   :  { %1307 = vmatpush3.bf16.msra.mxu0 %v1406_v8 }
  0xae   :  { %1308 = vmatprep.subr.bf16.mxu0 %v1586_v4 }
  0xb1   :  { %1309 = vmatpush3.bf16.msra.mxu0 %v1407_v9 }
  0xb2   :  { %1310 = vmatprep.subr.bf16.mxu0 %v1586_v4 }
  0xb5   :  { %1311 = vmatpush3.bf16.msra.mxu0 %v1408_v10 }
  0xb6   :  { %1312 = vmatprep.subr.bf16.mxu0 %v1586_v4 }
  0xb9   :  { %1313 = vmatpush3.bf16.msra.mxu0 %v1409_v11 }
 0x14f   :  { %v1217_v12 = vpop.f32.mrb[0].mxu0 }
 0x150   :  { %v1239_v13 = vpop.f32.mrb[0].mxu1  ;;  %v1218_v15 = vpop.f32.mrb[1].mxu0 }
 0x151   :  { %v1240_v16 = vpop.f32.mrb[1].mxu1  ;;  %v1219_v17 = vadd.f32 %v1218_v15, %v1217_v12  ;;  %v1220_v19 = vpop.f32.mrb[2].mxu0 }
 0x152   :  { %v1241_v18 = vadd.f32 %v1240_v16, %v1239_v13  ;;  %v1242_v20 = vpop.f32.mrb[2].mxu1  ;;  %v1221_v21 = vpop.f32.mrb[3].mxu0 }
 0x153   :  { %v1243_v22 = vpop.f32.mrb[3].mxu1  ;;  %v811_v23 = vadd.f32 %v1219_v17, %v1127_v14 }
 0x155   :  { %v851_v25 = vadd.f32 %v1241_v18, %v811_v23 }
 0x16f   :  { %v1261_v26 = vpop.f32.mrb[4].mxu0 }
 0x170   :  { %v1283_v27 = vpop.f32.mrb[4].mxu1  ;;  %v1262_v28 = vpop.f32.mrb[5].mxu0 }
 0x171   :  { %v1263_v29 = vadd.f32 %v1262_v28, %v1261_v26  ;;  %v1284_v30 = vpop.f32.mrb[5].mxu1  ;;  %v1264_v31 = vpop.f32.mrb[6].mxu0 }
 0x172   :  { %v1285_v32 = vadd.f32 %v1284_v30, %v1283_v27  ;;  %v1286_v33 = vpop.f32.mrb[6].mxu1  ;;  %v1265_v34 = vpop.f32.mrb[7].mxu0 }
 0x173   :  { %v891_v36 = vadd.f32 %v1263_v29, %v851_v25  ;;  %v1287_v37 = vpop.f32.mrb[7].mxu1 }
 0x175   :  { %v931_v38 = vadd.f32 %v1285_v32, %v891_v36 }
 0x177   :  { %v936_v39 = vmax.f32 %v931_v38, 0.0 }
 0x179   :  { %v937_v40 = vpack.c.bf16 %v936_v39, %v936_v39 }
 0x17b   :  { %1315 = vmatmul.mubr.bf16.vlgmr.msra.gmra.mrb[8].mxu0 %v937_v40 }
 0x24e   :  { %v1043_v42 = vpop.f32.mrb[8].mxu0 }
 0x24f   :  { %v1044_v43 = vadd.f32 %v1192_v41, %v1043_v42  ;;  %v1316_v44 = vpop.f32.mrb[9].mxu0 }
 0x250   :  { %v1046_v45 = vpop.f32.mrb[10].mxu0 }
 0x251   :  { %1049 = vst [vmem:[#allocation11] ss:$4 sps:$4 sm:$0x3f] %v1044_v43   ;;  %v1317_v47 = vpop.f32.mrb[11].mxu0  ;;  %v1058_v48 = vrot.slane %v1044_v43, 2  ;;  %v1063_v49 = vrot.slane %v1044_v43, 4 }
 0x253   :  { %v1060_v50 = vsub.f32 %v1044_v43, %v1058_v48  ;;  %v1065_v51 = vsub.f32 %v1044_v43, %v1063_v49 }
 0x255   :  { %v1061_v52 = vadd.f32 1e-06, %v1060_v50  ;;  %v1066_v53 = vadd.f32 1e-06, %v1065_v51 }
 0x257   :  { %v1062_v54 = vsel %vm1056_vm3, %v1061_v52, 0.0  ;;  %v1067_v55 = vsel %vm1056_vm3, %v1066_v53, 0.0 }
 0x258   :  { %v1068_v56 = vmul.f32 %v1062_v54, %v1062_v54  ;;  %v1079_v58 = vmul.f32 %v1067_v55, %v1067_v55 }
 0x25a   :  { %v1069_v57 = vsel %vm231_vm0, %v1068_v56, 0.0  ;;  %v1080_v59 = vsel %vm231_vm0, %v1079_v58, 0.0 }
 0x25b   :  { %1070 = vadd.xlane.f32.xlu0 %v1069_v57 }
 0x25f   :  { %1081 = vadd.xlane.f32.xlu0 %v1080_v59 }
 0x260   :  { %1535 = shalt.err (!%p1532_p2)
}
 0x261   :  { %s1536_s23 = scalar_lea.hbm %s1781_s7, 96 }
 0x262   :  { %p1537_p3 = scmp.ne.s32.totalorder %s1781_s7, %s1536_s23  ;;  %p1540_p4 = scmp.lt.u32.totalorder %s1536_s23, %s1781_s7 }
 0x264   :  { %p1542_p5 = pnand %p1540_p4, %p1537_p3 }
 0x266   :  { %1545 = shalt.err (!%p1542_p5)
}
 0x267   :  { %s1589_s29 = smov 32   ;;  %s1590_s0 = smov 2   ;;  %vm1090_vm6 = vcmask 7168   ;;  %vm1092_vm9 = vcmask 9216  }
 0x268   :  { %1105 = dma.vmem_to_hbm [thread:$0]  %s1100_s30, 96, %s1781_s7, [#allocation4], %s1589_s29, %s1589_s29, %s1590_s0  }
 0x269   :  { %s1591_s11 = smov [#allocation12]  }
 0x26a   :  { %s1112_s13 = sshll.u32 %s1591_s11, 4  ;;  %s1113_s13 = int_to_ptr.vmem [resolvable:$true] %s1112_s13 }
 0x26b   :  { %s1546_s7 = scalar_lea.vmem %s1113_s13, 32  ;;  %p1551_p7 = scmp.lt.s32.totalorder %s1113_s13, %s1113_s13 }
 0x26c   :  { %p1547_p6 = scmp.ne.s32.totalorder %s1113_s13, %s1546_s7  ;;  %p1552_p8 = scmp.lt.s32.totalorder %s1546_s7, %s1546_s7 }
 0x26e   :  { %p1553_p9 = por %p1552_p8, %p1551_p7 }
 0x270   :  { %p1554_p10 = pnand %p1553_p9, %p1547_p6 }
 0x2e8   :  { %v1071_v24 = vpop.xlane.xlu0 %1070 }
 0x2e9   :  { %1410 = vrsqrt.f32 %v1071_v24  ;;  %vm1074_vm4 = vcmp.eq.f32.partialorder %v1071_v24, inf  ;;  %v1077_v2 = vand.u32 2147483648, %v1071_v24  ;;  %vm1076_vm7 = vcmp.eq.f32.partialorder %v1071_v24, 0.0 }
 0x2ec   :  { %v1082_v60 = vpop.xlane.xlu0 %1081 }
 0x2ed   :  { %1412 = vrsqrt.f32 %v1082_v60  ;;  %vm1085_vm5 = vcmp.eq.f32.partialorder %v1082_v60, inf  ;;  %v1088_v1 = vand.u32 2147483648, %v1082_v60  ;;  %vm1087_vm8 = vcmp.eq.f32.partialorder %v1082_v60, 0.0 }
 0x2f3   :  { %v1411_v61 = vpop.eup %1410 }
 0x2f4   :  { %v1073_v35 = vmul.f32 %v1411_v61, %v1071_v24 }
 0x2f6   :  { %v1075_v0 = vsel %vm1074_vm4, %v1071_v24, %v1073_v35 }
 0x2f7   :  { %v1413_v62 = vpop.eup %1412  ;;  %v1078_v4 = vsel %vm1076_vm7, %v1077_v2, %v1075_v0 }
 0x2f8   :  { %v1084_v63 = vmul.f32 %v1413_v62, %v1082_v60 }
 0x2fa   :  { %v1086_v3 = vsel %vm1085_vm5, %v1082_v60, %v1084_v63 }
 0x2fb   :  { %v1089_v5 = vsel %vm1087_vm8, %v1088_v1, %v1086_v3 }
 0x2fc   :  { %v1091_v6 = vsel %vm1090_vm6, %v1078_v4, %v1089_v5 }
 0x2fd   :  { %1093 = vst.msk [vmem:[#allocation12] sm:$0x3] %vm1092_vm9, %v1091_v6 }
 0x2fe   :  { %1557 = shalt.err (!%p1554_p10)
}
 0x2ff   :  { %s1558_s16 = scalar_lea.hbm %s1782_s8, 32 }
 0x300   :  { %p1559_p11 = scmp.ne.s32.totalorder %s1782_s8, %s1558_s16  ;;  %p1562_p12 = scmp.lt.u32.totalorder %s1558_s16, %s1782_s8 }
 0x302   :  { %p1564_p13 = pnand %p1562_p12, %p1559_p11 }
 0x304   :  { %1567 = shalt.err (!%p1564_p13)
}
 0x305   :  { %1115 = dma.vmem_to_hbm [thread:$0]  %s1113_s13, 32, %s1782_s8, [#allocation13]  }
 0x306   :  { %1574 = dma.done.wait [#allocation4], 96  }
 0x307   :  { %1575 = vsyncadd [#allocation4], 4294967200 }
 0x308   :  { %1576 = dma.done.wait [#allocation13], 32  }
 0x309   :  { %1577 = vsyncadd [#allocation13], 4294967264 }
 0x30a   :  { %1122 = vsyncpa [#allocation3], 1 }
 0x30b   :  { %1123 = vsyncpa [#allocation6], 1 }
 0x30c   :  { %1124 = vsyncpa [#allocation9], 1 }
 0x30d   :  { %1125 = vsyncpa [#allocation4], 1 }
 0x30e   :  { %1126 = vsyncpa [#allocation13], 1 }

</bundles_post_ra>
